<compile_context>
chip_gen: v5e
topology: v5e:2x2
jax: 0.10.0
libtpu: 0.0.40
codegen_flags: <defaults>
</compile_context>

<pallas_src>
import functools

import jax
import jax.numpy as jnp
from jax.experimental import pallas as pl
from jax.experimental.pallas import tpu as pltpu


def _pd_quadratic_kernel(xt_ref, q_ref, w1_ref, b1_ref, w2_ref, b2_ref,
                         w3_ref, b3_ref, o_ref, *, in_dim):
    # xt: (D, TB) -- batch on the lane dimension.
    xt = xt_ref[...].astype(jnp.float32)

    # --- quadratic term: x^T (Q^T Q) x == ||Q x||^2 per column ---------------
    qx = jnp.dot(q_ref[...], xt, preferred_element_type=jnp.float32)   # (D, TB)
    quad = jnp.sum(qx * qx, axis=0, keepdims=True)                     # (1, TB)

    # --- fused f|g MLP --------------------------------------------------------
    # layer 1: shared input x, weights concatenated -> (2*H1, TB)
    h = jnp.tanh(jnp.dot(w1_ref[...], xt, preferred_element_type=jnp.float32)
                 + b1_ref[...])
    # layer 2: block-diagonal (f | g) -> (2*H2, TB)
    h = jnp.tanh(jnp.dot(w2_ref[...], h, preferred_element_type=jnp.float32)
                 + b2_ref[...])
    # layer 3: block "diagonal" ((D rows for f) + (1 row for g)) -> (D+1, TB)
    out3 = jnp.dot(w3_ref[...], h, preferred_element_type=jnp.float32) \
           + b3_ref[...]

    f_out = out3[:in_dim, :]                                           # (D, TB)
    g_out = jnp.maximum(out3[in_dim:in_dim + 1, :], 0.0)               # (1, TB)
    f_term = 0.5 * jnp.sum(f_out * f_out, axis=0, keepdims=True)       # (1, TB)

    # Lane-dense output store: full (1, TB) block, batch on lanes.
    o_ref[...] = (quad + f_term + g_out).astype(o_ref.dtype)


def _block_diag(a, b):
    m, n = a.shape
    p, q = b.shape
    top = jnp.concatenate([a, jnp.zeros((m, q), a.dtype)], axis=1)
    bot = jnp.concatenate([jnp.zeros((p, n), b.dtype), b], axis=1)
    return jnp.concatenate([top, bot], axis=0)


def fuse_params(params):
    """Fuse f/g branches into concatenated / block-diagonal transposed weights.

    Input params store weights as (in, out) and biases as (1, out); the fused
    weights are (out, in) (transposed layout for batch-on-lanes compute) and
    biases are (out, 1).
    """
    w1 = jnp.concatenate([params["wf1"].T, params["wg1"].T], axis=0)    # (2H1, D)
    b1 = jnp.concatenate([params["bf1"], params["bg1"]], axis=1).T      # (2H1, 1)
    w2 = _block_diag(params["wf2"].T, params["wg2"].T)                  # (2H2, 2H1)
    b2 = jnp.concatenate([params["bf2"], params["bg2"]], axis=1).T      # (2H2, 1)
    w3 = _block_diag(params["wf3"].T, params["wg3"].T)                  # (D+1, 2H2)
    b3 = jnp.concatenate([params["bf3"], params["bg3"]], axis=1).T      # (D+1, 1)
    return dict(Q=params["Q"], w1=w1, b1=b1, w2=w2, b2=b2, w3=w3, b3=b3)


def pd_quadratic_forward(x, fused, *, batch_tile=128):
    """x: (B, in_dim) float32; fused: output of fuse_params; returns (B, 1)."""
    B, D = x.shape
    n_tiles = pl.cdiv(B, batch_tile)
    Bp = n_tiles * batch_tile

    # Batch goes on the lane dimension; pad to a multiple of the tile.
    xt = x.T
    if Bp != B:
        xt = jnp.pad(xt, ((0, 0), (0, Bp - B)))

    plist = [fused["Q"], fused["w1"], fused["b1"], fused["w2"], fused["b2"],
             fused["w3"], fused["b3"]]

    x_spec = pl.BlockSpec((D, batch_tile), lambda i: (0, i))
    # Grid-invariant parameters: full-array blocks, constant index map
    # (stay resident across grid steps).
    param_specs = [pl.BlockSpec(p.shape, lambda i: (0, 0)) for p in plist]
    out_spec = pl.BlockSpec((1, batch_tile), lambda i: (0, i))

    kernel = functools.partial(_pd_quadratic_kernel, in_dim=D)

    y_row = pl.pallas_call(
        kernel,
        out_shape=jax.ShapeDtypeStruct((1, Bp), jnp.float32),
        grid_spec=pltpu.PrefetchScalarGridSpec(
            num_scalar_prefetch=0,
            grid=(n_tiles,),
            in_specs=[x_spec] + param_specs,
            out_specs=out_spec,
        ),
        compiler_params=pltpu.CompilerParams(
            dimension_semantics=("parallel",),
        ),
    )(xt, *plist)

    return y_row[0, :B].reshape(B, 1)


def init_params(key, in_dim, hidden_layers):
    """Deterministic synthetic init matching PDQuadraticNet.__init__ shapes."""
    h1, h2 = hidden_layers
    keys = jax.random.split(key, 12)

    def lin(k, fan_in, fan_out, scale=0.5):
        kw, kb = jax.random.split(k)
        w = scale * jax.random.normal(kw, (fan_in, fan_out), jnp.float32) \
            / jnp.sqrt(float(fan_in))
        b = 0.1 * jax.random.normal(kb, (1, fan_out), jnp.float32)
        return w, b

    wf1, bf1 = lin(keys[0], in_dim, h1)
    wf2, bf2 = lin(keys[1], h1, h2)
    wf3, bf3 = lin(keys[2], h2, in_dim)
    wg1, bg1 = lin(keys[3], in_dim, h1)
    wg2, bg2 = lin(keys[4], h1, h2)
    wg3, bg3 = lin(keys[5], h2, 1)

    # Q = eye(in_dim) + 0.1 * ones, as in the PyTorch __init__.
    Q = jnp.eye(in_dim, dtype=jnp.float32) + 0.1 * jnp.ones((in_dim, in_dim),
                                                            jnp.float32)
    return dict(Q=Q,
                wf1=wf1, bf1=bf1, wf2=wf2, bf2=bf2, wf3=wf3, bf3=bf3,
                wg1=wg1, bg1=bg1, wg2=wg2, bg2=bg2, wg3=wg3, bg3=bg3)


def reference_forward(x, p):
    """Pure-JAX reference mirroring the PyTorch forward (forms Q^T Q)."""
    qq = p["Q"].T @ p["Q"]
    quad = jnp.sum((x @ qq) * x, axis=1, keepdims=True)
    h = jnp.tanh(x @ p["wf1"] + p["bf1"])
    h = jnp.tanh(h @ p["wf2"] + p["bf2"])
    f_out = h @ p["wf3"] + p["bf3"]
    f_term = 0.5 * jnp.sum(f_out ** 2, axis=1, keepdims=True)
    h = jnp.tanh(x @ p["wg1"] + p["bg1"])
    h = jnp.tanh(h @ p["wg2"] + p["bg2"])
    g_out = jnp.maximum(h @ p["wg3"] + p["bg3"], 0.0)
    return quad + f_term + g_out


if __name__ == "__main__":
    in_dim = 16
    hidden_layers = (32, 32)
    batch = 256          # two 128-row tiles -> >=2 parallel grid steps (v7x)

    key = jax.random.PRNGKey(0)
    kx, kp = jax.random.split(key)
    x = jax.random.normal(kx, (batch, in_dim), jnp.float32)
    params = init_params(kp, in_dim, hidden_layers)
    fused = fuse_params(params)

    y = pd_quadratic_forward(x, fused, batch_tile=128)
    y = jax.block_until_ready(y)

    y_ref = reference_forward(x, params)
    assert y.shape == (batch, 1)
    assert jnp.allclose(y, y_ref, atol=1e-4, rtol=1e-5), (
        float(jnp.max(jnp.abs(y - y_ref))))

    # TODO(synk): forward_jacobian / disable_grad (training-time utilities) are
    # not implemented; only the forward pass is kernelized.
    print("KERNEL_OK")
</pallas_src>

<mosaic_0001>
module attributes {stable_mosaic.version = 11 : i64} {
  func.func @_pd_quadratic_kernel(%arg0: i32, %arg1: memref<16x128xf32, #tpu.memory_space<vmem>>, %arg2: memref<16x16xf32, #tpu.memory_space<vmem>>, %arg3: memref<64x16xf32, #tpu.memory_space<vmem>>, %arg4: memref<64x1xf32, #tpu.memory_space<vmem>>, %arg5: memref<64x64xf32, #tpu.memory_space<vmem>>, %arg6: memref<64x1xf32, #tpu.memory_space<vmem>>, %arg7: memref<17x64xf32, #tpu.memory_space<vmem>>, %arg8: memref<17x1xf32, #tpu.memory_space<vmem>>, %arg9: memref<1x128xf32, #tpu.memory_space<vmem>>) attributes {dimension_semantics = [#tpu.dimension_semantics<parallel>], iteration_bounds = array<i64: 2>, scalar_prefetch = 0 : i64, scratch_operands = 0 : i64, tpu.core_type = #tpu.core_type<tc>, window_params = [{transform_indices = @transform_0, window_bounds = array<i64: 16, 128>}, {pipeline_mode = #tpu.pipeline_mode<synchronous>, transform_indices = @transform_1, window_bounds = array<i64: 16, 16>}, {pipeline_mode = #tpu.pipeline_mode<synchronous>, transform_indices = @transform_2, window_bounds = array<i64: 64, 16>}, {pipeline_mode = #tpu.pipeline_mode<synchronous>, transform_indices = @transform_3, window_bounds = array<i64: 64, 1>}, {pipeline_mode = #tpu.pipeline_mode<synchronous>, transform_indices = @transform_4, window_bounds = array<i64: 64, 64>}, {pipeline_mode = #tpu.pipeline_mode<synchronous>, transform_indices = @transform_5, window_bounds = array<i64: 64, 1>}, {pipeline_mode = #tpu.pipeline_mode<synchronous>, transform_indices = @transform_6, window_bounds = array<i64: 17, 64>}, {pipeline_mode = #tpu.pipeline_mode<synchronous>, transform_indices = @transform_7, window_bounds = array<i64: 17, 1>}, {transform_indices = @transform_8, window_bounds = array<i64: 1, 128>}]} {
    %c0 = arith.constant 0 : index
    %c0_0 = arith.constant 0 : index
    %0 = vector.load %arg1[%c0, %c0_0] : memref<16x128xf32, #tpu.memory_space<vmem>>, vector<16x128xf32>
    %c0_1 = arith.constant 0 : index
    %c0_2 = arith.constant 0 : index
    %1 = vector.load %arg2[%c0_1, %c0_2] : memref<16x16xf32, #tpu.memory_space<vmem>>, vector<16x16xf32>
    %cst = arith.constant dense<0.000000e+00> : vector<16x128xf32>
    %2 = tpu.matmul %1, %0, %cst {dimension_numbers = #tpu.dot_dimension_numbers<[1], [0], [0], [1], [0, 0, 1, 1], [], []>} : vector<16x16xf32>, vector<16x128xf32>, vector<16x128xf32> -> vector<16x128xf32>
    %3 = arith.mulf %2, %2 : vector<16x128xf32>
    %cst_3 = arith.constant dense<0.000000e+00> : vector<128xf32>
    %4 = vector.multi_reduction <add>, %3, %cst_3 [0] : vector<16x128xf32> to vector<128xf32>
    %5 = vector.shape_cast %4 : vector<128xf32> to vector<1x128xf32>
    %c0_4 = arith.constant 0 : index
    %c0_5 = arith.constant 0 : index
    %6 = vector.load %arg3[%c0_4, %c0_5] : memref<64x16xf32, #tpu.memory_space<vmem>>, vector<64x16xf32>
    %cst_6 = arith.constant dense<0.000000e+00> : vector<64x128xf32>
    %7 = tpu.matmul %6, %0, %cst_6 {dimension_numbers = #tpu.dot_dimension_numbers<[1], [0], [0], [1], [0, 0, 1, 1], [], []>} : vector<64x16xf32>, vector<16x128xf32>, vector<64x128xf32> -> vector<64x128xf32>
    %c0_7 = arith.constant 0 : index
    %c0_8 = arith.constant 0 : index
    %8 = vector.load %arg4[%c0_7, %c0_8] : memref<64x1xf32, #tpu.memory_space<vmem>>, vector<64x1xf32>
    %9 = vector.broadcast %8 : vector<64x1xf32> to vector<64x128xf32>
    %10 = arith.addf %7, %9 : vector<64x128xf32>
    %11 = math.tanh %10 : vector<64x128xf32>
    %c0_9 = arith.constant 0 : index
    %c0_10 = arith.constant 0 : index
    %12 = vector.load %arg5[%c0_9, %c0_10] : memref<64x64xf32, #tpu.memory_space<vmem>>, vector<64x64xf32>
    %cst_11 = arith.constant dense<0.000000e+00> : vector<64x128xf32>
    %13 = tpu.matmul %12, %11, %cst_11 {dimension_numbers = #tpu.dot_dimension_numbers<[1], [0], [0], [1], [0, 0, 1, 1], [], []>} : vector<64x64xf32>, vector<64x128xf32>, vector<64x128xf32> -> vector<64x128xf32>
    %c0_12 = arith.constant 0 : index
    %c0_13 = arith.constant 0 : index
    %14 = vector.load %arg6[%c0_12, %c0_13] : memref<64x1xf32, #tpu.memory_space<vmem>>, vector<64x1xf32>
    %15 = vector.broadcast %14 : vector<64x1xf32> to vector<64x128xf32>
    %16 = arith.addf %13, %15 : vector<64x128xf32>
    %17 = math.tanh %16 : vector<64x128xf32>
    %c0_14 = arith.constant 0 : index
    %c0_15 = arith.constant 0 : index
    %18 = vector.load %arg7[%c0_14, %c0_15] : memref<17x64xf32, #tpu.memory_space<vmem>>, vector<17x64xf32>
    %cst_16 = arith.constant dense<0.000000e+00> : vector<17x128xf32>
    %19 = tpu.matmul %18, %17, %cst_16 {dimension_numbers = #tpu.dot_dimension_numbers<[1], [0], [0], [1], [0, 0, 1, 1], [], []>} : vector<17x64xf32>, vector<64x128xf32>, vector<17x128xf32> -> vector<17x128xf32>
    %c0_17 = arith.constant 0 : index
    %c0_18 = arith.constant 0 : index
    %20 = vector.load %arg8[%c0_17, %c0_18] : memref<17x1xf32, #tpu.memory_space<vmem>>, vector<17x1xf32>
    %21 = vector.broadcast %20 : vector<17x1xf32> to vector<17x128xf32>
    %22 = arith.addf %19, %21 : vector<17x128xf32>
    %23 = vector.extract_strided_slice %22 {offsets = [0, 0], sizes = [16, 128], strides = [1, 1]} : vector<17x128xf32> to vector<16x128xf32>
    %24 = vector.extract_strided_slice %22 {offsets = [16, 0], sizes = [1, 128], strides = [1, 1]} : vector<17x128xf32> to vector<1x128xf32>
    %cst_19 = arith.constant 0.000000e+00 : f32
    %25 = vector.broadcast %cst_19 : f32 to vector<1x128xf32>
    %26 = arith.maximumf %24, %25 : vector<1x128xf32>
    %27 = arith.mulf %23, %23 : vector<16x128xf32>
    %cst_20 = arith.constant dense<0.000000e+00> : vector<128xf32>
    %28 = vector.multi_reduction <add>, %27, %cst_20 [0] : vector<16x128xf32> to vector<128xf32>
    %29 = vector.shape_cast %28 : vector<128xf32> to vector<1x128xf32>
    %cst_21 = arith.constant 5.000000e-01 : f32
    %30 = vector.broadcast %cst_21 : f32 to vector<1x128xf32>
    %31 = arith.mulf %30, %29 : vector<1x128xf32>
    %32 = arith.addf %5, %31 : vector<1x128xf32>
    %33 = arith.addf %32, %26 : vector<1x128xf32>
    %c0_22 = arith.constant 0 : index
    %c0_23 = arith.constant 0 : index
    %34 = vector.load %arg9[%c0_22, %c0_23] : memref<1x128xf32, #tpu.memory_space<vmem>>, vector<1x128xf32>
    tpu.vector_store %arg9[%c0_22, %c0_23], %33 {strides = array<i32>} : memref<1x128xf32, #tpu.memory_space<vmem>>, vector<1x128xf32>,
    return
  }
  func.func @transform_0(%arg0: i32) -> (i32, i32) {
    %c0_i32 = arith.constant 0 : i32
    %c0_i32_0 = arith.constant 0 : i32
    return %c0_i32, %arg0 : i32, i32
  }
  func.func @transform_1(%arg0: i32) -> (i32, i32) {
    %c0_i32 = arith.constant 0 : i32
    %c0_i32_0 = arith.constant 0 : i32
    %c0_i32_1 = arith.constant 0 : i32
    return %c0_i32, %c0_i32_0 : i32, i32
  }
  func.func @transform_2(%arg0: i32) -> (i32, i32) {
    %c0_i32 = arith.constant 0 : i32
    %c0_i32_0 = arith.constant 0 : i32
    %c0_i32_1 = arith.constant 0 : i32
    return %c0_i32, %c0_i32_0 : i32, i32
  }
  func.func @transform_3(%arg0: i32) -> (i32, i32) {
    %c0_i32 = arith.constant 0 : i32
    %c0_i32_0 = arith.constant 0 : i32
    %c0_i32_1 = arith.constant 0 : i32
    return %c0_i32, %c0_i32_0 : i32, i32
  }
  func.func @transform_4(%arg0: i32) -> (i32, i32) {
    %c0_i32 = arith.constant 0 : i32
    %c0_i32_0 = arith.constant 0 : i32
    %c0_i32_1 = arith.constant 0 : i32
    return %c0_i32, %c0_i32_0 : i32, i32
  }
  func.func @transform_5(%arg0: i32) -> (i32, i32) {
    %c0_i32 = arith.constant 0 : i32
    %c0_i32_0 = arith.constant 0 : i32
    %c0_i32_1 = arith.constant 0 : i32
    return %c0_i32, %c0_i32_0 : i32, i32
  }
  func.func @transform_6(%arg0: i32) -> (i32, i32) {
    %c0_i32 = arith.constant 0 : i32
    %c0_i32_0 = arith.constant 0 : i32
    %c0_i32_1 = arith.constant 0 : i32
    return %c0_i32, %c0_i32_0 : i32, i32
  }
  func.func @transform_7(%arg0: i32) -> (i32, i32) {
    %c0_i32 = arith.constant 0 : i32
    %c0_i32_0 = arith.constant 0 : i32
    %c0_i32_1 = arith.constant 0 : i32
    return %c0_i32, %c0_i32_0 : i32, i32
  }
  func.func @transform_8(%arg0: i32) -> (i32, i32) {
    %c0_i32 = arith.constant 0 : i32
    %c0_i32_0 = arith.constant 0 : i32
    return %c0_i32, %arg0 : i32, i32
  }
}

</mosaic_0001>

<bundles_post_ra>
// kernel: tpu_custom_call.1
= control target key start
LH: loop header
LB: loop body
LE: loop exit
PB: predicated region body
PF: predicated region fallthrough
CT: control target
= control target key end

     0   :  { %13 = vsyncpa [#allocation4], 0  ;;  %s1249_s0 = inlined_call_operand.vmem [shape: f32[16,256], index: 0, kind: input, shape index: {}]   ;;  %s1250_s1 = inlined_call_operand.vmem [shape: f32[16,16], index: 1, kind: input, shape index: {}]   ;;  %s1251_s2 = inlined_call_operand.vmem [shape: f32[64,16], index: 2, kind: input, shape index: {}]   ;;  %s1252_s3 = inlined_call_operand.vmem [shape: f32[64,1], index: 3, kind: input, shape index: {}]   ;;  %s1253_s4 = inlined_call_operand.vmem [shape: f32[64,64], index: 4, kind: input, shape index: {}]   ;;  %s1254_s5 = inlined_call_operand.vmem [shape: f32[64,1], index: 5, kind: input, shape index: {}]   ;;  %s1255_s6 = inlined_call_operand.vmem [shape: f32[17,64], index: 6, kind: input, shape index: {}]   ;;  %s1256_s7 = inlined_call_operand.vmem [shape: f32[17,1], index: 7, kind: input, shape index: {}]   ;;  %s1257_s8 = inlined_call_operand.hbm [shape: f32[1,256], index: 8, kind: output, shape index: {}]  }
   0x1   :  { %15 = vsyncpa [#allocation4 + $0x1], 0  ;;  %s1013_s27 = smov 0   ;;  %s1015_s28 = smov 0  }
   0x2   :  { %s1017_s29 = smov 0   ;;  %s1019_s30 = smov 0  }
   0x3 LB: > { %s787_s9 = sadd.s32 4294967295, %s965_s30   ;;  %s788_s10 = sadd.s32 4294967294, %s965_s30   ;;  %s965_s30 = sphi %s1019_s30, %s1263_s30   ;;  %s961_s29 = sphi %s1017_s29, %s1262_s29   ;;  %s957_s28 = sphi %s1015_s28, %s1261_s28   ;;  %s953_s27 = sphi %s1013_s27, %s1260_s27  }
   0x4   : > { %s1036_s11 = sadd.s32 1, %s965_s30   ;;  %s28_s12 = sadd.s32 1, %s961_s29 }
   0x5   : > { %s25_s13 = ssub.s32 %s965_s30, %s1036_s11  ;;  %p35_p0 = scmp.ne.s32.totalorder %s961_s29, %s957_s28 }
   0x6   : > { %p26_p1 = scmp.eq.s32.totalorder %s25_s13, 0  ;;  %p36_p2 = scmp.eq.s32.totalorder %s965_s30, 0 }
   0x7   : > { %p212_p3 = scmp.eq.s32.totalorder %s787_s9, 1  ;;  %p217_p4 = scmp.ne.s32.totalorder %s957_s28, %s953_s27 }
   0x8   : > { %s1049_s14 = scalar_select %p26_p1, %s961_s29, %s28_s12  }
   0x9   : > { %p37_p5 = por %p36_p2, %p35_p0  ;;  %p1051_p6 = por %p212_p3, %p35_p0 }
   0xa   : > { %p218_p7 = scmp.eq.s32.totalorder %s788_s10, 1  ;;  %p790_p9 = scmp.ge.s32.totalorder %s965_s30, 2 }
   0xc   : > { %p1055_p8 = por %p218_p7, %p217_p4  ;;  %255 = sbr.rel (%p790_p9) target bundleno = 23 (0x17), region = 44 }
  0x11   : > { %258 = sbr.rel (!%p37_p5) target bundleno = 23 (0x17), region = 48  ;;  %s260_s17 = sand.u32 (%p37_p5), 1, %s961_s29  }
  0x12   : > { %s792_s18 = sshll.u32 (%p37_p5), %s965_s30, 3  ;;  %s791_s19 = sshll.u32 (%p37_p5), %s260_s17, 4 }
  0x13   : > { %s264_s22 = scalar_lea.vmem (%p37_p5), %s1249_s0, %s792_s18  ;;  %s262_s23 = scalar_lea.vmem (%p37_p5), [#allocation2], %s791_s19 }
  0x14   : > { %v295_v0 = vld [vmem:[%s264_s22] sm:$0xff] (%p37_p5)  ;;  %v297_v1 = vld [vmem:[%s264_s22 + $0x10] sm:$0xff] (%p37_p5) }
  0x15   : > { %296 = vst [vmem:[%s262_s23] sm:$0xff] (%p37_p5), %v295_v0 }
  0x16   : > { %298 = vst [vmem:[%s262_s23 + $0x8] sm:$0xff] %v297_v1 }
  0x17 PF: > { %p793_p10 = scmp.ge.s32.totalorder %s965_s30, 1  ;;  %p303_p11 = scmp.lt.s32.totalorder %s965_s30, 3 }
  0x19   : > { %p304_p12 = pnand %p793_p10, %p303_p11 }
  0x1a   : > { %s1076_s12 = sand.u32 (!%p304_p12), 1, %s957_s28   ;;  %s723_s24 = scalar_lea.hbm (!%p304_p12), %s1257_s8, %s787_s9 }
  0x1b   : > { %307 = sbr.rel (%p304_p12) target bundleno = 579 (0x243), region = 86  ;;  %s794_s13 = sshll.u32 (!%p304_p12), %s1076_s12, 4 }
  0x1c   : > { %s312_s17 = scalar_lea.vmem (!%p304_p12), [#allocation2], %s794_s13  ;;  %s341_s25 = scalar_lea.vmem (!%p304_p12), [#allocation3], %s1076_s12 }
  0x1d   : > { %s725_s26 = sshll.u32 (!%p304_p12), %s341_s25, 4  ;;  %s727_s10 = sshll.u32 (!%p304_p12), %s723_s24, 4  ;;  %s726_s26 = int_to_ptr.vmem [resolvable:$true] %s725_s26  ;;  %s728_s10 = int_to_ptr.hbm [resolvable:$true] %s727_s10 }
  0x1e   : > { %s715_s13 = scalar_lea.sflag (!%p304_p12), [#allocation4], %s1076_s12  ;;  %s923_s20 = scalar_lea.hbm (!%p304_p12), %s1257_s8, 2 }
  0x20   : > { %v400_v2 = vld [vmem:[%s1252_s3 + $0x38] sm:$0xff]  ;;  %v398_v3 = vld [vmem:[%s1252_s3 + $0x28] sm:$0xff]  ;;  %v967_v4 = vmov 0   ;;  %v342_v6 = vld [vmem:[%s312_s17] sm:$0xff]  ;;  %vm346_vm0 = vcmask 130048   ;;  %vm570_vm1 = vcmask 523264  }
  0x21   : > { %869 = vset.pattern.permute.xlu1 %v967_v4  ;;  %868 = vset.pattern.permute.xlu0 %v967_v4  ;;  %v343_v5 = vld [vmem:[%s312_s17 + $0x8] sm:$0xff]  ;;  %v385_v7 = vld [vmem:[%s1251_s2] sm:$0xff]  ;;  %v391_v8 = vld [vmem:[%s1251_s2 + $0x30] sm:$0xff]  ;;  %s917_s17 = sshra.s32 %s728_s10, 4  ;;  %s918_s17 = int_to_ptr.hbm [resolvable:$true] %s917_s17 }
  0x22   : > { %438 = vperm.xlu0 %868, %v400_v2   ;;  %428 = vperm.xlu1 %869, %v398_v3   ;;  %v399_v9 = vld [vmem:[%s1252_s3 + $0x30] sm:$0xff]  ;;  %v397_v10 = vld [vmem:[%s1252_s3 + $0x20] sm:$0xff]  ;;  %v396_v11 = vld [vmem:[%s1252_s3 + $0x18] sm:$0xff]  ;;  %s919_s18 = scalar_lea.hbm %s918_s17, 1  ;;  %p924_p2 = scmp.lt.s32.totalorder %s918_s17, %s1257_s8 }
  0x23   : > { %870 = vset.pattern.permute.xlu2 %v967_v4  ;;  %479 = vmatpush.msra.mxu1 %v343_v5  ;;  %v386_v12 = vld [vmem:[%s1251_s2 + $0x8] sm:$0xff]  ;;  %v392_v13 = vld [vmem:[%s1251_s2 + $0x38] sm:$0xff]  ;;  %v393_v15 = vld [vmem:[%s1252_s3] sm:$0xff]  ;;  %p920_p13 = scmp.ne.s32.totalorder %s918_s17, %s919_s18  ;;  %p925_p3 = scmp.lt.s32.totalorder %s923_s20, %s919_s18 }
  0x24   : > { %818 = vmatpush.msra.mxu3 %v343_v5  ;;  %367 = vmatpush.msra.mxu0 %v343_v5  ;;  %v394_v14 = vld [vmem:[%s1252_s3 + $0x8] sm:$0xff]  ;;  %v395_v16 = vld [vmem:[%s1252_s3 + $0x10] sm:$0xff]  ;;  %v529_v18 = vld [vmem:[%s1254_s5 + $0x38] sm:$0xff] }
  0x25   : > { %480 = vmatpush.msra.mxu1 %v342_v6  ;;  %418 = vperm.xlu2 %870, %v396_v11   ;;  %v387_v17 = vld [vmem:[%s1251_s2 + $0x10] sm:$0xff]  ;;  %v527_v20 = vld [vmem:[%s1254_s5 + $0x28] sm:$0xff]  ;;  %v388_v21 = vld [vmem:[%s1251_s2 + $0x18] sm:$0xff]  ;;  %p921_p0 = pnand %p920_p13, %p1051_p6  ;;  %p926_p4 = por %p925_p3, %p924_p2 }
  0x26   : > { %819 = vmatpush.msra.mxu3 %v342_v6  ;;  %797 = vmatmul.msk.f32.vlgmr.msra.gmra.mxu1 %vm346_vm0, %v385_v7  ;;  %v528_v19 = vld [vmem:[%s1254_s5 + $0x30] sm:$0xff]  ;;  %v526_v22 = vld [vmem:[%s1254_s5 + $0x20] sm:$0xff]  ;;  %v525_v23 = vld [vmem:[%s1254_s5 + $0x18] sm:$0xff] }
  0x27   : > { %803 = vmatmul.msk.f32.vlgmr.msra.gmra.mxu3 %vm346_vm0, %v391_v8  ;;  %368 = vmatpush.msra.mxu0 %v342_v6  ;;  %v524_v24 = vld [vmem:[%s1254_s5 + $0x10] sm:$0xff]  ;;  %v389_v25 = vld [vmem:[%s1251_s2 + $0x20] sm:$0xff]  ;;  %v523_v26 = vld [vmem:[%s1254_s5 + $0x8] sm:$0xff]  ;;  %p922_p1 = pneg %p921_p0 }
  0x28   : > { %v522_v27 = vld [vmem:[%s1254_s5] sm:$0xff]  ;;  %v390_v29 = vld [vmem:[%s1251_s2 + $0x28] sm:$0xff]  ;;  %v649_v31 = vld [vmem:[%s1256_s7 + $0x10] sm:$0x1] }
  0x29   : > { %v647_v28 = vld [vmem:[%s1256_s7] sm:$0xff]  ;;  %v648_v30 = vld [vmem:[%s1256_s7 + $0x8] sm:$0xff]  ;;  %v517_v2 = vld [vmem:[%s1253_s4 + $0x18] sm:$0xff]  ;;  %p927_p5 = pnand %p926_p4, %p922_p1 }
  0x2a   : > { %433 = vperm.xlu0 %868, %v399_v9   ;;  %423 = vperm.xlu1 %869, %v397_v10   ;;  %v344_v38 = vld [vmem:[%s1250_s1] sm:$0xff]  ;;  %v345_v42 = vld [vmem:[%s1250_s1 + $0x8] sm:$0xff]  ;;  %v516_v6 = vld [vmem:[%s1253_s4 + $0x10] sm:$0xff] }
  0x2b   : > { %795 = vmatmul.msk.f32.vlgmr.msra.gmra.mxu0 %vm346_vm0, %v344_v38  ;;  %v514_v1 = vld [vmem:[%s1253_s4] sm:$0xff]  ;;  %v515_v4 = vld [vmem:[%s1253_s4 + $0x8] sm:$0xff]  ;;  %v520_v8 = vld [vmem:[%s1253_s4 + $0x30] sm:$0xff] }
  0x2c   : > { %v518_v5 = vld [vmem:[%s1253_s4 + $0x20] sm:$0xff]  ;;  %v519_v7 = vld [vmem:[%s1253_s4 + $0x28] sm:$0xff]  ;;  %v521_v9 = vld [vmem:[%s1253_s4 + $0x38] sm:$0xff] }
  0x2d   : > { %413 = vperm.xlu2 %870, %v395_v16  }
  0x2e   : > { %798 = vmatmul.msk.f32.gmra.mxu1 %vm346_vm0, %v386_v12 }
  0x2f   : > { %804 = vmatmul.msk.f32.gmra.mxu3 %vm346_vm0, %v392_v13 }
  0x32   : > { %408 = vperm.xlu0 %868, %v394_v14   ;;  %403 = vperm.xlu1 %869, %v393_v15  }
  0x33   : > { %796 = vmatmul.msk.f32.gmra.mxu0 %vm346_vm0, %v345_v42 }
  0x35   : > { %567 = vperm.xlu2 %870, %v529_v18  }
  0x36   : > { %799 = vmatmul.msk.f32.gmra.mxu1 %vm346_vm0, %v387_v17 }
  0x3a   : > { %562 = vperm.xlu0 %868, %v528_v19   ;;  %557 = vperm.xlu1 %869, %v527_v20  }
  0x3d   : > { %552 = vperm.xlu2 %870, %v526_v22  }
  0x3e   : > { %800 = vmatmul.msk.f32.gmra.mxu1 %vm346_vm0, %v388_v21 }
  0x42   : > { %547 = vperm.xlu0 %868, %v525_v23   ;;  %542 = vperm.xlu1 %869, %v524_v24  }
  0x45   : > { %537 = vperm.xlu2 %870, %v523_v26  }
  0x46   : > { %801 = vmatmul.msk.f32.gmra.mxu1 %vm346_vm0, %v389_v25 }
  0x4a   : > { %532 = vperm.xlu0 %868, %v522_v27   ;;  %652 = vperm.xlu1 %869, %v647_v28  }
  0x4d   : > { %657 = vperm.xlu2 %870, %v648_v30  }
  0x4e   : > { %802 = vmatmul.msk.f32.gmra.mxu1 %vm346_vm0, %v390_v29 }
  0x52   : > { %662 = vperm.xlu0 %868, %v649_v31  }
  0x7f   : > { %v419_v48 = vpop.permute.xlu2 %418 }
  0x87   : > { %v414_v54 = vpop.permute.xlu2 %413 }
  0x8f   : > { %v568_v19 = vpop.permute.xlu2 %567 }
  0x94   : > { %v439_v32 = vpop.permute.xlu0 %438  ;;  %v429_v46 = vpop.permute.xlu1 %428 }
  0x97   : > { %v553_v24 = vpop.permute.xlu2 %552 }
  0x9c   : > { %v434_v36 = vpop.permute.xlu0 %433  ;;  %v424_v49 = vpop.permute.xlu1 %423 }
  0xa3   : > { %v482_v33 = vpop.f32.mrf.mxu1 }
  0xa4   : > { %v409_v56 = vpop.permute.xlu0 %408  ;;  %v404_v57 = vpop.permute.xlu1 %403 }
  0xa5   : > { %v483_v60 = vadd.f32 %v482_v33, %v404_v57 }
  0xa8   : > { %v370_v10 = vpop.f32.mrf.mxu0 }
  0xa9   : > { %v376_v11 = vmul.f32 %v370_v10, %v370_v10 }
  0xaa   : > { %v500_v34 = vpop.f32.mrf.mxu3 }
  0xab   : > { %v485_v35 = vpop.f32.mrf.mxu1  ;;  %v501_v37 = vadd.f32 %v500_v34, %v434_v36  ;;  %v538_v36 = vpop.permute.xlu2 %537 }
  0xac   : > { %v486_v58 = vadd.f32 %v485_v35, %v409_v56  ;;  %v563_v20 = vpop.permute.xlu0 %562  ;;  %v558_v23 = vpop.permute.xlu1 %557 }
  0xad   : > { %871 = vtanh.f32 %v501_v37 }
  0xb0   : > { %v373_v12 = vpop.f32.mrf.mxu0 }
  0xb1   : > { %v377_v13 = vmul.f32 %v373_v12, %v373_v12 }
  0xb2   : > { %v503_v39 = vpop.f32.mrf.mxu3 }
  0xb3   : > { %v504_v40 = vadd.f32 %v503_v39, %v439_v32  ;;  %v488_v41 = vpop.f32.mrf.mxu1  ;;  %v872_v43 = vpop.eup %871  ;;  %v378_v14 = vadd.f32 %v377_v13, %v376_v11 }
  0xb4   : > { %v489_v55 = vadd.f32 %v488_v41, %v414_v54  ;;  %v548_v28 = vpop.permute.xlu0 %547  ;;  %v543_v33 = vpop.permute.xlu1 %542 }
  0xb5   : > { %873 = vtanh.f32 %v504_v40  ;;  %v658_v54 = vpop.permute.xlu2 %657 }
  0xbb   : > { %v874_v44 = vpop.eup %873  ;;  %v491_v45 = vpop.f32.mrf.mxu1 }
  0xbc   : > { %603 = vmatpush.msrb.mxu0 %v874_v44  ;;  %820 = vmatpush.msra.mxu2 %v874_v44  ;;  %v492_v53 = vadd.f32 %v491_v45, %v419_v48  ;;  %v533_v39 = vpop.permute.xlu0 %532  ;;  %v645_v48 = vld [vmem:[%s1255_s6 + $0x8] sm:$0xff] }
  0xbe   : > { %604 = vmatpush.msrb.mxu0 %v872_v43  ;;  %821 = vmatpush.msra.mxu2 %v872_v43 }
  0xc3   : > { %v494_v47 = vpop.f32.mrf.mxu1 }
  0xc4   : > { %v495_v51 = vadd.f32 %v494_v47, %v424_v49  ;;  %v646_v49 = vld [vmem:[%s1255_s6 + $0x10] sm:$0x1] }
  0xcb   : > { %v497_v50 = vpop.f32.mrf.mxu1 }
  0xcc   : > { %v498_v52 = vadd.f32 %v497_v50, %v429_v46  ;;  %v644_v46 = vld [vmem:[%s1255_s6] sm:$0xff] }
  0xce   : > { %875 = vtanh.f32 %v498_v52  ;;  %v379_v52 = vrot.slane %v378_v14, 4 }
  0xcf   : > { %877 = vtanh.f32 %v495_v51  ;;  %v653_v51 = vpop.permute.xlu1 %652 }
  0xd0   : > { %879 = vtanh.f32 %v492_v53  ;;  %v380_v57 = vadd.f32 %v379_v52, %v378_v14 }
  0xd1   : > { %881 = vtanh.f32 %v489_v55 }
  0xd2   : > { %883 = vtanh.f32 %v486_v58 }
  0xd3   : > { %885 = vtanh.f32 %v483_v60 }
  0xd4   : > { %v876_v59 = vpop.eup %875 }
  0xd5   : > { %605 = vmatpush.msrb.mxu0 %v876_v59  ;;  %822 = vmatpush.msra.mxu2 %v876_v59  ;;  %v878_v61 = vpop.eup %877 }
  0xd6   : > { %v880_v62 = vpop.eup %879 }
  0xd7   : > { %606 = vmatpush.msrb.mxu0 %v878_v61  ;;  %823 = vmatpush.msra.mxu2 %v878_v61  ;;  %v882_v63 = vpop.eup %881  ;;  %v381_v61 = vrot.slane %v380_v57, 2 }
  0xd8   : > { %v884_v0 = vpop.eup %883 }
  0xd9   : > { %607 = vmatpush.msrb.mxu0 %v880_v62  ;;  %824 = vmatpush.msra.mxu2 %v880_v62  ;;  %v886_v3 = vpop.eup %885 }
  0xdb   : > { %608 = vmatpush.msrb.mxu0 %v882_v63  ;;  %825 = vmatpush.msra.mxu2 %v882_v63 }
  0xdd   : > { %609 = vmatpush.msrb.mxu0 %v884_v0  ;;  %826 = vmatpush.msra.mxu2 %v884_v0  ;;  %v382_v0 = vadd.f32 %v381_v61, %v380_v57 }
  0xdf   : > { %610 = vmatpush.msrb.mxu0 %v886_v3  ;;  %827 = vmatpush.msra.mxu2 %v886_v3 }
  0xe0   : > { %805 = vmatmul.msk.f32.vlgmr.msrb.gmra.mxu0 %vm570_vm1, %v514_v1  ;;  %808 = vmatmul.msk.f32.vlgmr.msra.gmra.mxu2 %vm570_vm1, %v517_v2 }
  0xe8   : > { %806 = vmatmul.msk.f32.gmra.mxu0 %vm570_vm1, %v515_v4  ;;  %809 = vmatmul.msk.f32.gmra.mxu2 %vm570_vm1, %v518_v5  ;;  %v383_v4 = vrot.slane %v382_v0, 1 }
  0xf0   : > { %807 = vmatmul.msk.f32.gmra.mxu0 %vm570_vm1, %v516_v6  ;;  %810 = vmatmul.msk.f32.gmra.mxu2 %vm570_vm1, %v519_v7  ;;  %v663_v6 = vpop.permute.xlu0 %662 }
  0xf8   : > { %811 = vmatmul.msk.f32.gmra.mxu2 %vm570_vm1, %v520_v8 }
 0x100   : > { %812 = vmatmul.msk.f32.gmra.mxu2 %vm570_vm1, %v521_v9  ;;  %v384_v9 = vadd.f32 %v383_v4, %v382_v0 }
 0x15d   : > { %v612_v18 = vpop.f32.mrf.mxu0 }
 0x15e   : > { %v613_v41 = vadd.f32 %v612_v18, %v533_v39 }
 0x163   : > { %v621_v15 = vpop.f32.mrf.mxu2 }
 0x164   : > { %v622_v32 = vadd.f32 %v621_v15, %v548_v28 }
 0x165   : > { %v615_v22 = vpop.f32.mrf.mxu0 }
 0x166   : > { %v616_v38 = vadd.f32 %v615_v22, %v538_v36 }
 0x16b   : > { %v624_v16 = vpop.f32.mrf.mxu2 }
 0x16c   : > { %v625_v30 = vadd.f32 %v624_v16, %v553_v24 }
 0x16d   : > { %v618_v31 = vpop.f32.mrf.mxu0 }
 0x16e   : > { %v619_v35 = vadd.f32 %v618_v31, %v543_v33 }
 0x173   : > { %v627_v17 = vpop.f32.mrf.mxu2 }
 0x174   : > { %v628_v29 = vadd.f32 %v627_v17, %v558_v23 }
 0x17b   : > { %v630_v21 = vpop.f32.mrf.mxu2 }
 0x17c   : > { %v631_v26 = vadd.f32 %v630_v21, %v563_v20 }
 0x183   : > { %v633_v25 = vpop.f32.mrf.mxu2 }
 0x184   : > { %v634_v27 = vadd.f32 %v633_v25, %v568_v19 }
 0x186   : > { %887 = vtanh.f32 %v634_v27 }
 0x187   : > { %889 = vtanh.f32 %v631_v26 }
 0x188   : > { %891 = vtanh.f32 %v628_v29 }
 0x189   : > { %893 = vtanh.f32 %v625_v30 }
 0x18a   : > { %895 = vtanh.f32 %v622_v32 }
 0x18b   : > { %897 = vtanh.f32 %v619_v35 }
 0x18c   : > { %v888_v34 = vpop.eup %887  ;;  %899 = vtanh.f32 %v616_v38 }
 0x18d   : > { %682 = vmatpush.msrb.mxu3 %v888_v34  ;;  %v890_v37 = vpop.eup %889  ;;  %901 = vtanh.f32 %v613_v41 }
 0x18e   : > { %v892_v40 = vpop.eup %891 }
 0x18f   : > { %683 = vmatpush.msrb.mxu3 %v890_v37  ;;  %v894_v42 = vpop.eup %893 }
 0x190   : > { %v896_v43 = vpop.eup %895 }
 0x191   : > { %684 = vmatpush.msrb.mxu3 %v892_v40  ;;  %v898_v44 = vpop.eup %897 }
 0x192   : > { %v900_v45 = vpop.eup %899 }
 0x193   : > { %685 = vmatpush.msrb.mxu3 %v894_v42  ;;  %v902_v47 = vpop.eup %901 }
 0x195   : > { %686 = vmatpush.msrb.mxu3 %v896_v43 }
 0x197   : > { %687 = vmatpush.msrb.mxu3 %v898_v44 }
 0x199   : > { %688 = vmatpush.msrb.mxu3 %v900_v45 }
 0x19b   : > { %689 = vmatpush.msrb.mxu3 %v902_v47 }
 0x19c   : > { %813 = vmatmul.msk.f32.vlgmr.msrb.gmra.mxu3 %vm570_vm1, %v644_v46 }
 0x1a4   : > { %814 = vmatmul.msk.f32.gmra.mxu3 %vm570_vm1, %v645_v48 }
 0x1ac   : > { %815 = vmatmul.msk.f32.gmra.mxu3 %vm570_vm1, %v646_v49 }
 0x21f   : > { %v691_v50 = vpop.f32.mrf.mxu3 }
 0x220   : > { %v692_v53 = vadd.f32 %v691_v50, %v653_v51 }
 0x222   : > { %v701_v58 = vmul.f32 %v692_v53, %v692_v53 }
 0x227   : > { %v694_v55 = vpop.f32.mrf.mxu3 }
 0x228   : > { %v695_v56 = vadd.f32 %v694_v55, %v658_v54 }
 0x22a   : > { %v702_v59 = vmul.f32 %v695_v56, %v695_v56 }
 0x22c   : > { %v703_v60 = vadd.f32 %v702_v59, %v701_v58 }
 0x22e   : > { %v704_v62 = vrot.slane %v703_v60, 4 }
 0x22f   : > { %v697_v3 = vpop.f32.mrf.mxu3 }
 0x230   : > { %v705_v63 = vadd.f32 %v704_v62, %v703_v60  ;;  %v698_v7 = vadd.f32 %v697_v3, %v663_v6 }
 0x232   : > { %v706_v1 = vrot.slane %v705_v63, 2  ;;  %v700_v11 = vmax.f32 %v698_v7, 0.0 }
 0x234   : > { %v707_v2 = vadd.f32 %v706_v1, %v705_v63 }
 0x236   : > { %v708_v5 = vrot.slane %v707_v2, 1 }
 0x238   : > { %v709_v8 = vadd.f32 %v708_v5, %v707_v2 }
 0x23a   : > { %v710_v10 = vmul.f32 0.5, %v709_v8 }
 0x23c   : > { %v711_v12 = vadd.f32 %v710_v10, %v384_v9 }
 0x23e   : > { %v712_v13 = vadd.f32 %v711_v12, %v700_v11 }
 0x240   : > { %713 = vst [vmem:[%s341_s25] sm:$0x1] %v712_v13 }
 0x241   : > { %930 = shalt.err (!%p927_p5)
}
 0x242   : > { %828 = dma.vmem_to_hbm [thread:$0]  (%p1051_p6), %s726_s26, 16, %s728_s10, %s715_s13  }
 0x243 PF: > { %s739_s12 = sand.u32 1, %s953_s27   ;;  %p831_p7 = pnand %p790_p9, %p1055_p8 }
 0x244   : > { %s740_s23 = scalar_lea.sflag [#allocation4], %s739_s12 }
 0x245   : > { %p832_p10 = pneg %p831_p7 }
 0x247   : > { %948 = dma.done.wait (%p832_p10), %s740_s23, 16  }
 0x248   : > { %950 = vsyncadd (%p832_p10), %s740_s23, 4294967280  ;;  %p18_p11 = scmp.ge.s32.totalorder %s1036_s11, 4   ;;  %s1260_s27 = smov %s957_s28 }
 0x249   : > { %s1261_s28 = smov %s961_s29  ;;  %s1262_s29 = smov %s1049_s14 }
 0x24a   : > { %s1263_s30 = smov %s1036_s11  ;;  %20 = sbr.rel (!%p18_p11) target bundleno = 3 (0x3), region = 130 }
 0x24f   :  { %745 = vsyncpa [#allocation4], 1 }
 0x250   :  { %747 = vsyncpa [#allocation4 + $0x1], 1 }

</bundles_post_ra>
